<compile_context>
chip_gen: v7x
topology: tpu7x:2x2x1
jax: 0.10.0
libtpu: 0.0.40
codegen_flags: <defaults>
</compile_context>

<pallas_src>
import functools

import jax
import jax.numpy as jnp
from jax.experimental import pallas as pl
from jax.experimental.pallas import tpu as pltpu

LANE = 128


def _round_up(x, m):
    return (x + m - 1) // m * m


# ----------------------------- Pallas kernel ------------------------------ #

def cconv_kernel(a_ref, w_ref, b_ref, o_ref):
    # a_ref: (TM, 2K) bf16 patch tile ; w_ref: (2K, 2*C_pad) bf16 (VMEM-resident)
    # b_ref: (1, 2*C_pad) f32 combined complex bias ; o_ref: (TM, 2*C_pad) f32
    y = jnp.dot(a_ref[...], w_ref[...], preferred_element_type=jnp.float32)
    o_ref[...] = y + b_ref[...]


def run_cconv_core(a, w, b, *, block_rows):
    """a: (M_pad, 2K) bf16, w: (2K, 2*C_pad) bf16, b: (1, 2*C_pad) f32."""
    m_pad, k2 = a.shape
    c2p = w.shape[1]
    grid = (m_pad // block_rows,)

    flops = 2 * m_pad * k2 * c2p
    bytes_accessed = m_pad * k2 * 2 + k2 * c2p * 2 + c2p * 4 + m_pad * c2p * 4

    return pl.pallas_call(
        cconv_kernel,
        out_shape=jax.ShapeDtypeStruct((m_pad, c2p), jnp.float32),
        grid_spec=pltpu.PrefetchScalarGridSpec(
            num_scalar_prefetch=0,
            grid=grid,
            in_specs=[
                # A is tiled along M and streamed (double-buffered by Pallas).
                pl.BlockSpec((block_rows, k2), lambda i: (i, 0)),
                # Weights / bias: constant index_map -> stay VMEM-resident.
                pl.BlockSpec((k2, c2p), lambda i: (0, 0)),
                pl.BlockSpec((1, c2p), lambda i: (0, 0)),
            ],
            out_specs=pl.BlockSpec((block_rows, c2p), lambda i: (i, 0)),
        ),
        compiler_params=pltpu.CompilerParams(
            dimension_semantics=("parallel",),
            vmem_limit_bytes=32 * 1024 * 1024,
        ),
        cost_estimate=pl.CostEstimate(
            flops=flops, transcendentals=0, bytes_accessed=bytes_accessed),
    )(a, w, b)


# ------------------------------- Wrapper ----------------------------------- #

def init_cconv2d_params(key, in_channels, out_channels, kernel_size):
    kh, kw = kernel_size
    fan_in = in_channels * kh * kw
    fan_out = out_channels * kh * kw
    xavier_bound = (6.0 / (fan_in + fan_out)) ** 0.5
    bias_bound = 1.0 / (fan_in ** 0.5)
    k1, k2, k3, k4 = jax.random.split(key, 4)
    return {
        # nn.init.xavier_uniform_ on (C_out, C_in, kh, kw) conv weights
        "w_real": jax.random.uniform(k1, (out_channels, in_channels, kh, kw),
                                     jnp.float32, -xavier_bound, xavier_bound),
        "w_imag": jax.random.uniform(k2, (out_channels, in_channels, kh, kw),
                                     jnp.float32, -xavier_bound, xavier_bound),
        # default nn.Conv2d bias init: U(-1/sqrt(fan_in), 1/sqrt(fan_in))
        "b_real": jax.random.uniform(k3, (out_channels,), jnp.float32,
                                     -bias_bound, bias_bound),
        "b_imag": jax.random.uniform(k4, (out_channels,), jnp.float32,
                                     -bias_bound, bias_bound),
    }


def _im2col(xc, kh, kw, sh, sw, h_out, w_out):
    """xc: (B, C_in, H, W) -> (B*H_out*W_out, C_in*kh*kw), ordering matches
    weight.reshape(C_out, C_in*kh*kw)."""
    b, c_in = xc.shape[0], xc.shape[1]
    cols = []
    for i in range(kh):
        for j in range(kw):
            sl = xc[:, :, i:i + sh * (h_out - 1) + 1:sh,
                          j:j + sw * (w_out - 1) + 1:sw]  # (B, C_in, H_out, W_out)
            cols.append(sl)
    p = jnp.stack(cols, axis=-1)              # (B, C_in, H_out, W_out, kh*kw)
    p = jnp.transpose(p, (0, 2, 3, 1, 4))     # (B, H_out, W_out, C_in, kh*kw)
    return p.reshape(b * h_out * w_out, c_in * kh * kw)


@functools.partial(jax.jit,
                   static_argnames=("kernel_size", "stride", "padding", "block_rows"))
def cconv2d_forward(x, params, *, kernel_size, stride=(1, 1), padding=(0, 0),
                    block_rows=512):
    """x: (B, C_in, H, W, 2) f32 -> (B, C_out, H_out, W_out, 2) f32."""
    b, c_in, h, w, _ = x.shape
    kh, kw = kernel_size
    sh, sw = stride
    ph, pw = padding
    c_out = params["w_real"].shape[0]

    if ph or pw:
        x = jnp.pad(x, ((0, 0), (0, 0), (ph, ph), (pw, pw), (0, 0)))
        h, w = h + 2 * ph, w + 2 * pw

    h_out = (h - kh) // sh + 1
    w_out = (w - kw) // sw + 1
    m = b * h_out * w_out
    k = c_in * kh * kw
    k2 = 2 * k
    c_pad = _round_up(c_out, LANE // 2)       # 2*c_pad is a multiple of 128 (lane-dense store)

    x_r = x[..., 0]
    x_i = x[..., 1]
    p_r = _im2col(x_r, kh, kw, sh, sw, h_out, w_out)
    p_i = _im2col(x_i, kh, kw, sh, sw, h_out, w_out)
    a = jnp.concatenate([p_r, p_i], axis=1).astype(jnp.bfloat16)     # (M, 2K)

    # Complex-multiply weight arrangement with zero channel padding.
    w_r = params["w_real"].reshape(c_out, k).T                       # (K, C_out)
    w_i = params["w_imag"].reshape(c_out, k).T
    zpad = jnp.zeros((k, c_pad - c_out), jnp.float32)
    top = jnp.concatenate([w_r, zpad, w_i, zpad], axis=1)            # (K, 2*C_pad)
    bot = jnp.concatenate([-w_i, zpad, w_r, zpad], axis=1)
    w_cat = jnp.concatenate([top, bot], axis=0).astype(jnp.bfloat16)  # (2K, 2*C_pad)

    def pad_c(v):
        return jnp.concatenate([v, jnp.zeros((c_pad - c_out,), jnp.float32)])
    b_cat = jnp.concatenate([pad_c(params["b_real"] - params["b_imag"]),
                             pad_c(params["b_real"] + params["b_imag"])])[None, :]

    # Row tile: at most `block_rows`, at least an 8-multiple; pad M so it divides evenly.
    tm = min(block_rows, _round_up(m, 8))
    m_pad = _round_up(m, tm)
    if m_pad != m:
        a = jnp.pad(a, ((0, m_pad - m), (0, 0)))

    out = run_cconv_core(a, w_cat, b_cat, block_rows=tm)             # (M_pad, 2*C_pad)

    real = out[:m, :c_out].reshape(b, h_out, w_out, c_out).transpose(0, 3, 1, 2)
    imag = out[:m, c_pad:c_pad + c_out].reshape(b, h_out, w_out, c_out).transpose(0, 3, 1, 2)
    return jnp.stack([real, imag], axis=-1)   # (B, C_out, H_out, W_out, 2)


# ------------------------------ Reference ---------------------------------- #

def cconv2d_reference(x, params, *, kernel_size, stride, padding=(0, 0)):
    """Pure-JAX f32 reference (lax.conv) mirroring the PyTorch forward."""
    del kernel_size
    x_r = x[..., 0]
    x_i = x[..., 1]
    pad = [(padding[0], padding[0]), (padding[1], padding[1])]

    def conv(inp, wgt, bias):
        y = jax.lax.conv_general_dilated(
            inp, wgt, window_strides=stride, padding=pad,
            dimension_numbers=("NCHW", "OIHW", "NCHW"))
        return y + bias[None, :, None, None]

    rr = conv(x_r, params["w_real"], params["b_real"])   # real_conv(x_real)
    ri = conv(x_i, params["w_real"], params["b_real"])   # real_conv(x_imag)
    ir = conv(x_r, params["w_imag"], params["b_imag"])   # imag_conv(x_real)
    ii = conv(x_i, params["w_imag"], params["b_imag"])   # imag_conv(x_imag)
    c_real = rr - ii
    c_imag = ir + ri
    return jnp.stack([c_real, c_imag], axis=-1)


# --------------------------------- Main ------------------------------------ #

if __name__ == "__main__":
    key = jax.random.PRNGKey(0)
    k_param, k_x = jax.random.split(key)

    B, C_in, H, W = 2, 2, 16, 16
    C_out = 45
    kernel_size = (7, 5)
    stride = (2, 2)

    x = jax.random.normal(k_x, (B, C_in, H, W, 2), jnp.float32)
    params = init_cconv2d_params(k_param, in_channels=C_in, out_channels=C_out,
                                 kernel_size=kernel_size)

    y = cconv2d_forward(x, params, kernel_size=kernel_size, stride=stride)
    jax.block_until_ready(y)

    H_out = (H - kernel_size[0]) // stride[0] + 1
    W_out = (W - kernel_size[1]) // stride[1] + 1
    assert y.shape == (B, C_out, H_out, W_out, 2), (y.shape, (B, C_out, H_out, W_out, 2))
    assert bool(jnp.all(jnp.isfinite(y)))

    y_ref = cconv2d_reference(x, params, kernel_size=kernel_size, stride=stride)
    max_err = float(jnp.max(jnp.abs(y - y_ref)))
    # bf16-streamed MXU vs f32 reference -> small numerical difference expected.
    assert max_err < 1e-1, max_err

    print("KERNEL_OK")
</pallas_src>

<mosaic_0001>
module attributes {stable_mosaic.version = 11 : i64} {
  func.func @cconv_kernel(%arg0: i32, %arg1: memref<64x140xbf16, #tpu.memory_space<vmem>>, %arg2: memref<140x128xbf16, #tpu.memory_space<vmem>>, %arg3: memref<1x128xf32, #tpu.memory_space<vmem>>, %arg4: memref<64x128xf32, #tpu.memory_space<vmem>>) attributes {dimension_semantics = [#tpu.dimension_semantics<parallel>], iteration_bounds = array<i64: 1>, scalar_prefetch = 0 : i64, scratch_operands = 0 : i64, tpu.core_type = #tpu.core_type<tc>, window_params = [{transform_indices = @transform_0, window_bounds = array<i64: 64, 140>}, {pipeline_mode = #tpu.pipeline_mode<synchronous>, transform_indices = @transform_1, window_bounds = array<i64: 140, 128>}, {pipeline_mode = #tpu.pipeline_mode<synchronous>, transform_indices = @transform_2, window_bounds = array<i64: 1, 128>}, {transform_indices = @transform_3, window_bounds = array<i64: 64, 128>}]} {
    %c0 = arith.constant 0 : index
    %c0_0 = arith.constant 0 : index
    %0 = vector.load %arg1[%c0, %c0_0] : memref<64x140xbf16, #tpu.memory_space<vmem>>, vector<64x140xbf16>
    %c0_1 = arith.constant 0 : index
    %c0_2 = arith.constant 0 : index
    %1 = vector.load %arg2[%c0_1, %c0_2] : memref<140x128xbf16, #tpu.memory_space<vmem>>, vector<140x128xbf16>
    %cst = arith.constant dense<0.000000e+00> : vector<64x128xf32>
    %2 = tpu.matmul %0, %1, %cst {dimension_numbers = #tpu.dot_dimension_numbers<[1], [0], [0], [1], [0, 0, 1, 1], [], []>} : vector<64x140xbf16>, vector<140x128xbf16>, vector<64x128xf32> -> vector<64x128xf32>
    %c0_3 = arith.constant 0 : index
    %c0_4 = arith.constant 0 : index
    %3 = vector.load %arg3[%c0_3, %c0_4] : memref<1x128xf32, #tpu.memory_space<vmem>>, vector<1x128xf32>
    %4 = vector.broadcast %3 : vector<1x128xf32> to vector<64x128xf32>
    %5 = arith.addf %2, %4 : vector<64x128xf32>
    %c0_5 = arith.constant 0 : index
    %c0_6 = arith.constant 0 : index
    %6 = vector.load %arg4[%c0_5, %c0_6] : memref<64x128xf32, #tpu.memory_space<vmem>>, vector<64x128xf32>
    tpu.vector_store %arg4[%c0_5, %c0_6], %5 {strides = array<i32>} : memref<64x128xf32, #tpu.memory_space<vmem>>, vector<64x128xf32>,
    return
  }
  func.func @transform_0(%arg0: i32) -> (i32, i32) {
    %c0_i32 = arith.constant 0 : i32
    %c0_i32_0 = arith.constant 0 : i32
    return %arg0, %c0_i32 : i32, i32
  }
  func.func @transform_1(%arg0: i32) -> (i32, i32) {
    %c0_i32 = arith.constant 0 : i32
    %c0_i32_0 = arith.constant 0 : i32
    %c0_i32_1 = arith.constant 0 : i32
    return %c0_i32, %c0_i32_0 : i32, i32
  }
  func.func @transform_2(%arg0: i32) -> (i32, i32) {
    %c0_i32 = arith.constant 0 : i32
    %c0_i32_0 = arith.constant 0 : i32
    %c0_i32_1 = arith.constant 0 : i32
    return %c0_i32, %c0_i32_0 : i32, i32
  }
  func.func @transform_3(%arg0: i32) -> (i32, i32) {
    %c0_i32 = arith.constant 0 : i32
    %c0_i32_0 = arith.constant 0 : i32
    return %arg0, %c0_i32 : i32, i32
  }
}

</mosaic_0001>

<bundles_post_ra>
// kernel: cconv2d_forward.1
= control target key start
LH: loop header
LB: loop body
LE: loop exit
PB: predicated region body
PF: predicated region fallthrough
CT: control target
= control target key end

     0   :  { %v293_v0 = vmov 0   ;;  %vm137_vm0 = vcmask 97280   ;;  %vm150_vm1 = vcmask 1045504   ;;  %s396_s1 = inlined_call_operand.vmem [shape: bf16[140,128], index: 1, kind: input, shape index: {}]   ;;  %s397_s0 = inlined_call_operand.vmem [shape: bf16[64,140], index: 0, kind: input, shape index: {}]   ;;  %s398_s2 = inlined_call_operand.vmem [shape: f32[1,128], index: 2, kind: input, shape index: {}]   ;;  %s399_s3 = inlined_call_operand.vmem [shape: f32[64,128], index: 3, kind: output, shape index: {}]  }
   0x1   :  { %154 = vmatprep.subr.bf16.mxu0 %v293_v0  ;;  %253 = vmatprep.subr.bf16.mxu1 %v293_v0  ;;  %v272_v1 = vld [vmem:[%s396_s1] sm:$0xff]   ;;  %v273_v2 = vld [vmem:[%s396_s1 + $0x8] sm:$0xff]   ;;  %v274_v3 = vld [vmem:[%s396_s1 + $0x10] sm:$0xff]  }
   0x2   :  { %155 = vmatpush1.bf16.msra.mxu0 %v272_v1  ;;  %262 = vmatpush1.bf16.msra.mxu1 %v272_v1  ;;  %v275_v4 = vld [vmem:[%s396_s1 + $0x18] sm:$0xff]   ;;  %v283_v5 = vld [vmem:[%s397_s0 + $0x4] ss:$8 sps:$4 sm:$0xff]   ;;  %v278_v9 = vld [vmem:[%s396_s1 + $0x30] sm:$0xff]  }
   0x3   :  { %156 = vmatprep.subr.bf16.mxu0 %v293_v0  ;;  %254 = vmatprep.subr.bf16.mxu1 %v293_v0  ;;  %v286_v6 = vld [vmem:[%s397_s0 + $0x24] ss:$8 sps:$4 sm:$0xff]   ;;  %v279_v10 = vld [vmem:[%s396_s1 + $0x38] sm:$0xff]   ;;  %v281_v13 = vld [vmem:[%s397_s0] ss:$8 sps:$4 sm:$0xff]  }
   0x4   :  { %249 = vmatprep.mubr.msk.bf16.mxu0 %vm137_vm0, %v283_v5  ;;  %251 = vmatprep.mubr.msk.bf16.mxu1 %vm137_vm0, %v286_v6  ;;  %v276_v7 = vld [vmem:[%s396_s1 + $0x20] sm:$0xff]   ;;  %v277_v8 = vld [vmem:[%s396_s1 + $0x28] sm:$0xff]   ;;  %v287_v15 = vld [vmem:[%s397_s0 + $0x14] ss:$8 sps:$4 sm:$0xff]  }
   0x5   :  { %v280_v11 = vld [vmem:[%s396_s1 + $0x40] sm:$0x3f]   ;;  %v289_v16 = vld [vmem:[%s397_s0 + $0x34] ss:$8 sps:$4 sm:$0xff]   ;;  %v291_v17 = vld [vmem:[%s397_s0 + $0x10] ss:$8 sps:$4 sm:$0xff]  }
   0x6   :  { %157 = vmatpush1.bf16.msra.mxu0 %v273_v2  ;;  %263 = vmatpush1.bf16.msra.mxu1 %v273_v2  ;;  %v152_v12 = vsel %vm150_vm1, %v280_v11, 0  ;;  %v284_v14 = vld [vmem:[%s397_s0 + $0x20] ss:$8 sps:$4 sm:$0xff]   ;;  %v292_v18 = vld [vmem:[%s397_s0 + $0x30] ss:$8 sps:$4 sm:$0xff]  }
   0x7   :  { %158 = vmatprep.subr.bf16.mxu0 %v293_v0  ;;  %255 = vmatprep.subr.bf16.mxu1 %v293_v0  ;;  %v231_v19 = vld [vmem:[%s398_s2] ss:$0 sm:$0xff] }
   0xa   :  { %159 = vmatpush1.bf16.msra.mxu0 %v274_v3  ;;  %264 = vmatpush1.bf16.msra.mxu1 %v274_v3 }
   0xb   :  { %160 = vmatprep.subr.bf16.mxu0 %v293_v0  ;;  %256 = vmatprep.subr.bf16.mxu1 %v293_v0 }
   0xe   :  { %161 = vmatpush1.bf16.msra.mxu0 %v275_v4  ;;  %265 = vmatpush1.bf16.msra.mxu1 %v275_v4 }
   0xf   :  { %162 = vmatprep.subr.bf16.mxu0 %v293_v0  ;;  %257 = vmatprep.subr.bf16.mxu1 %v293_v0 }
  0x12   :  { %163 = vmatpush1.bf16.msra.mxu0 %v276_v7  ;;  %266 = vmatpush1.bf16.msra.mxu1 %v276_v7 }
  0x13   :  { %164 = vmatprep.subr.bf16.mxu0 %v293_v0  ;;  %258 = vmatprep.subr.bf16.mxu1 %v293_v0 }
  0x16   :  { %165 = vmatpush1.bf16.msra.mxu0 %v277_v8  ;;  %267 = vmatpush1.bf16.msra.mxu1 %v277_v8 }
  0x17   :  { %166 = vmatprep.subr.bf16.mxu0 %v293_v0  ;;  %259 = vmatprep.subr.bf16.mxu1 %v293_v0 }
  0x1a   :  { %167 = vmatpush1.bf16.msra.mxu0 %v278_v9  ;;  %268 = vmatpush1.bf16.msra.mxu1 %v278_v9 }
  0x1b   :  { %168 = vmatprep.subr.bf16.mxu0 %v293_v0  ;;  %260 = vmatprep.subr.bf16.mxu1 %v293_v0 }
  0x1e   :  { %169 = vmatpush1.bf16.msra.mxu0 %v279_v10  ;;  %269 = vmatpush1.bf16.msra.mxu1 %v279_v10 }
  0x1f   :  { %170 = vmatprep.subr.bf16.mxu0 %v293_v0  ;;  %261 = vmatprep.subr.bf16.mxu1 %v293_v0 }
  0x22   :  { %171 = vmatpush1.bf16.msra.mxu0 %v152_v12  ;;  %270 = vmatpush1.bf16.msra.mxu1 %v152_v12 }
  0x25   :  { %187 = vmatmul.mubr.bf16.vlgmr.msra.gmra.mrb[0].mxu0 %v281_v13  ;;  %203 = vmatmul.mubr.bf16.vlgmr.msra.gmra.mrb[0].mxu1 %v284_v14 }
  0x26   :  { %250 = vmatprep.mubr.msk.bf16.mxu0 %vm137_vm0, %v287_v15  ;;  %252 = vmatprep.mubr.msk.bf16.mxu1 %vm137_vm0, %v289_v16 }
  0x2d   :  { %195 = vmatmul.mubr.bf16.gmra.mrb[4].mxu0 %v291_v17  ;;  %211 = vmatmul.mubr.bf16.gmra.mrb[4].mxu1 %v292_v18 }
  0xf8   :  { %v188_v20 = vpop.f32.mrb[0].mxu0  ;;  %v204_v21 = vpop.f32.mrb[0].mxu1 }
  0xf9   :  { %v189_v22 = vadd.f32 %v231_v19, %v188_v20  ;;  %v205_v23 = vadd.f32 %v231_v19, %v204_v21  ;;  %v190_v24 = vpop.f32.mrb[1].mxu0  ;;  %v206_v25 = vpop.f32.mrb[1].mxu1 }
  0xfa   :  { %v191_v26 = vpop.f32.mrb[2].mxu0  ;;  %v207_v27 = vpop.f32.mrb[2].mxu1 }
  0xfb   :  { %219 = vst [vmem:[%s399_s3] sm:$0xff] %v189_v22  ;;  %223 = vst [vmem:[%s399_s3 + $0x20] sm:$0xff] %v205_v23  ;;  %v192_v28 = vadd.f32 %v231_v19, %v191_v26  ;;  %v208_v29 = vadd.f32 %v231_v19, %v207_v27  ;;  %v193_v30 = vpop.f32.mrb[3].mxu0  ;;  %v209_v31 = vpop.f32.mrb[3].mxu1 }
  0xfd   :  { %220 = vst [vmem:[%s399_s3 + $0x8] sm:$0xff] %v192_v28  ;;  %224 = vst [vmem:[%s399_s3 + $0x28] sm:$0xff] %v208_v29 }
 0x100   :  { %v196_v32 = vpop.f32.mrb[4].mxu0  ;;  %v212_v33 = vpop.f32.mrb[4].mxu1 }
 0x101   :  { %v197_v34 = vadd.f32 %v231_v19, %v196_v32  ;;  %v213_v35 = vadd.f32 %v231_v19, %v212_v33  ;;  %v198_v36 = vpop.f32.mrb[5].mxu0  ;;  %v214_v37 = vpop.f32.mrb[5].mxu1 }
 0x102   :  { %v199_v38 = vpop.f32.mrb[6].mxu0  ;;  %v215_v39 = vpop.f32.mrb[6].mxu1 }
 0x103   :  { %221 = vst [vmem:[%s399_s3 + $0x10] sm:$0xff] %v197_v34  ;;  %225 = vst [vmem:[%s399_s3 + $0x30] sm:$0xff] %v213_v35  ;;  %v200_v40 = vadd.f32 %v231_v19, %v199_v38  ;;  %v216_v41 = vadd.f32 %v231_v19, %v215_v39  ;;  %v201_v42 = vpop.f32.mrb[7].mxu0  ;;  %v217_v43 = vpop.f32.mrb[7].mxu1 }
 0x105   :  { %222 = vst [vmem:[%s399_s3 + $0x18] sm:$0xff] %v200_v40  ;;  %226 = vst [vmem:[%s399_s3 + $0x38] sm:$0xff] %v216_v41 }

</bundles_post_ra>
